<compile_context>
chip_gen: v7x
topology: tpu7x:2x2x1
jax: 0.10.0
libtpu: 0.0.40
codegen_flags: <defaults>
</compile_context>

<pallas_src>
import jax
import jax.numpy as jnp
from jax.experimental import pallas as pl
from jax.experimental.pallas import tpu as pltpu

LANE = 128            # lane width: last dim of the lane-dense slab
TILE_R = 4096         # (4096, 128) f32 = 2 MiB per block
SMALL_BATCH = 32768   # below this, plain XLA elementwise is strictly faster


def affine_kernel(x_ref, w_ref, b_ref, o_ref):
    # x_ref / o_ref: (tile_r, 128) VMEM tiles; w_ref / b_ref: (1,) SMEM scalars.
    w = w_ref[0]
    b = b_ref[0]
    o_ref[...] = (x_ref[...] * w + b).astype(o_ref.dtype)


def simple_model_forward(x, weight, bias, *, min_pallas_batch=SMALL_BATCH):
    """y = x @ weight.T + bias with weight (1, 1), bias (1,), x (batch, 1)."""
    batch, in_f = x.shape
    out_f = weight.shape[0]
    assert in_f == 1 and out_f == 1
    w0 = weight.reshape(-1)   # (1,)
    b0 = bias.reshape(-1)     # (1,)

    # ---- small-batch fast path: skip Pallas entirely ----
    if batch < min_pallas_batch:
        return x * w0[0] + b0[0]

    # ---- lane-dense view: (batch, 1) -> (rows, 128) ----
    rows = -(-batch // LANE)              # ceil(batch / 128)
    pad = rows * LANE - batch
    x_flat = x.reshape(-1)
    if pad:
        # Only materialize a padded temp when batch isn't lane-aligned.
        x_flat = jnp.pad(x_flat, (0, pad))
    x2d = x_flat.reshape(rows, LANE)

    # Biggest block that fits the data; ragged row tail handled by Pallas'
    # masked edge blocks (no extra row padding in the wrapper).
    tile_r = min(rows, TILE_R)
    grid = (pl.cdiv(rows, tile_r),)

    itemsize = jnp.dtype(x.dtype).itemsize
    y2d = pl.pallas_call(
        affine_kernel,
        out_shape=jax.ShapeDtypeStruct((rows, LANE), x.dtype),
        grid=grid,
        in_specs=[
            pl.BlockSpec((tile_r, LANE), lambda i: (i, 0)),
            pl.BlockSpec(memory_space=pltpu.MemorySpace.SMEM),  # weight (1,)
            pl.BlockSpec(memory_space=pltpu.MemorySpace.SMEM),  # bias   (1,)
        ],
        out_specs=pl.BlockSpec((tile_r, LANE), lambda i: (i, 0)),
        compiler_params=pltpu.CompilerParams(
            dimension_semantics=("parallel",),
            # Let XLA fuse the cheap pad/reshape producer into the custom
            # call's input instead of materializing it in HBM first.
            allow_input_fusion=[True, False, False],
        ),
        cost_estimate=pl.CostEstimate(
            flops=2 * rows * LANE,
            transcendentals=0,
            bytes_accessed=2 * rows * LANE * itemsize,   # read x + write y
        ),
        # The padded temp is dead after the call: donate it to the output.
        # (Only alias when we actually created a fresh temp, never the
        # caller's x buffer.)
        input_output_aliases=({0: 0} if pad else {}),
    )(x2d, w0, b0)

    # Restore the module's (batch, 1) output layout.
    return y2d.reshape(-1)[:batch].reshape(batch, out_f)


if __name__ == "__main__":
    key = jax.random.PRNGKey(0)
    k_x, k_w, k_b, k_x2, k_x3 = jax.random.split(key, 5)

    # Deterministic parameter init mimicking nn.Linear default:
    # uniform(-1/sqrt(in_features), 1/sqrt(in_features)) with in_features=1.
    weight = jax.random.uniform(k_w, (1, 1), dtype=jnp.float32, minval=-1.0, maxval=1.0)
    bias = jax.random.uniform(k_b, (1,), dtype=jnp.float32, minval=-1.0, maxval=1.0)

    # 1) Small batch: exercises the plain-XLA fast path.
    batch = 8
    x = jax.random.normal(k_x, (batch, 1), dtype=jnp.float32)
    y = simple_model_forward(x, weight, bias)
    jax.block_until_ready(y)
    y_ref = x @ weight.T + bias
    assert y.shape == (batch, 1)
    assert jnp.allclose(y, y_ref, atol=1e-6, rtol=1e-6)

    # 2) Small, lane-unaligned batch forced through the Pallas path:
    #    exercises padding + single full-array block (rows < 8).
    batch2 = 300
    x2 = jax.random.normal(k_x2, (batch2, 1), dtype=jnp.float32)
    y2 = simple_model_forward(x2, weight, bias, min_pallas_batch=0)
    jax.block_until_ready(y2)
    y2_ref = x2 @ weight.T + bias
    assert y2.shape == (batch2, 1)
    assert jnp.allclose(y2, y2_ref, atol=1e-6, rtol=1e-6)

    # 3) Longer stream: exercises the multi-step grid with 2 MiB blocks,
    #    a ragged last block, padding + the donated temp path.
    batch3 = TILE_R * LANE + 300          # rows = 4099 -> grid = (2,)
    x3 = jax.random.normal(k_x3, (batch3, 1), dtype=jnp.float32)
    y3 = simple_model_forward(x3, weight, bias)
    jax.block_until_ready(y3)
    y3_ref = x3 * weight[0, 0] + bias[0]
    assert y3.shape == (batch3, 1)
    assert jnp.allclose(y3, y3_ref, atol=1e-6, rtol=1e-6)

    print("KERNEL_OK")
</pallas_src>

<mosaic_0001>
module attributes {stable_mosaic.version = 11 : i64} {
  func.func @affine_kernel(%arg0: i32, %arg1: memref<3x128xf32, #tpu.memory_space<vmem>>, %arg2: memref<1xf32, #tpu.memory_space<smem>>, %arg3: memref<1xf32, #tpu.memory_space<smem>>, %arg4: memref<3x128xf32, #tpu.memory_space<vmem>>) attributes {dimension_semantics = [#tpu.dimension_semantics<parallel>], iteration_bounds = array<i64: 1>, scalar_prefetch = 0 : i64, scratch_operands = 0 : i64, tpu.core_type = #tpu.core_type<tc>, window_params = [{transform_indices = @transform_0, window_bounds = array<i64: 3, 128>}, {transform_indices = @transform_1, window_bounds = array<i64: 1>}, {transform_indices = @transform_2, window_bounds = array<i64: 1>}, {transform_indices = @transform_3, window_bounds = array<i64: 3, 128>}]} {
    %c0 = arith.constant 0 : index
    %0 = memref.load %arg2[%c0] : memref<1xf32, #tpu.memory_space<smem>>
    %c0_0 = arith.constant 0 : index
    %1 = memref.load %arg3[%c0_0] : memref<1xf32, #tpu.memory_space<smem>>
    %c0_1 = arith.constant 0 : index
    %c0_2 = arith.constant 0 : index
    %2 = vector.load %arg1[%c0_1, %c0_2] : memref<3x128xf32, #tpu.memory_space<vmem>>, vector<3x128xf32>
    %3 = vector.broadcast %0 : f32 to vector<3x128xf32>
    %4 = arith.mulf %2, %3 : vector<3x128xf32>
    %5 = vector.broadcast %1 : f32 to vector<3x128xf32>
    %6 = arith.addf %4, %5 : vector<3x128xf32>
    %c0_3 = arith.constant 0 : index
    %c0_4 = arith.constant 0 : index
    %7 = vector.load %arg4[%c0_3, %c0_4] : memref<3x128xf32, #tpu.memory_space<vmem>>, vector<3x128xf32>
    tpu.vector_store %arg4[%c0_3, %c0_4], %6 {strides = array<i32>} : memref<3x128xf32, #tpu.memory_space<vmem>>, vector<3x128xf32>,
    return
  }
  func.func @transform_0(%arg0: i32) -> (i32, i32) {
    %c0_i32 = arith.constant 0 : i32
    %c0_i32_0 = arith.constant 0 : i32
    return %arg0, %c0_i32 : i32, i32
  }
  func.func @transform_1(%arg0: i32) -> i32 {
    %c0_i32 = arith.constant 0 : i32
    %c0_i32_0 = arith.constant 0 : i32
    return %c0_i32 : i32
  }
  func.func @transform_2(%arg0: i32) -> i32 {
    %c0_i32 = arith.constant 0 : i32
    %c0_i32_0 = arith.constant 0 : i32
    return %c0_i32 : i32
  }
  func.func @transform_3(%arg0: i32) -> (i32, i32) {
    %c0_i32 = arith.constant 0 : i32
    %c0_i32_0 = arith.constant 0 : i32
    return %arg0, %c0_i32 : i32, i32
  }
}

</mosaic_0001>

<bundles_post_ra>
// kernel: tpu_custom_call.1
= control target key start
LH: loop header
LB: loop body
LE: loop exit
PB: predicated region body
PF: predicated region fallthrough
CT: control target
= control target key end

     0   :  { %10 = vsyncpa [#allocation5], 0  ;;  %s154_s0 = inlined_call_operand.hbm [shape: f32[3,128], index: 0, kind: input, shape index: {}, may-alias: {0,3}]   ;;  %s155_s1 = inlined_call_operand.<no memory space> [shape: f32[1], index: 1, kind: input, shape index: {}]   ;;  %s156_s2 = inlined_call_operand.<no memory space> [shape: f32[1], index: 2, kind: input, shape index: {}]   ;;  %s157_s3 = inlined_call_operand.hbm [shape: f32[3,128], index: 3, kind: output, shape index: {}, may-alias: {0,3}]  }
   0x1   :  { %11 = vsyncpa [#allocation6], 0  ;;  %s102_s12 = smov [#allocation4]   ;;  %s54_s16 = scalar_lea.hbm %s154_s0, 64 }
   0x2   :  { %s18_s13 = sshll.u32 %s102_s12, 4  ;;  %p55_p0 = scmp.ne.s32.totalorder %s154_s0, %s54_s16  ;;  %s19_s13 = int_to_ptr.vmem [resolvable:$true] %s18_s13 }
   0x3   :  { %p58_p1 = scmp.lt.u32.totalorder %s54_s16, %s154_s0 }
   0x5   :  { %p60_p2 = pnand %p58_p1, %p55_p0 }
   0x7   :  { %63 = shalt.err (!%p60_p2)
}
   0x8   :  { %s64_s21 = scalar_lea.vmem %s19_s13, 64  ;;  %p69_p4 = scmp.lt.s32.totalorder %s19_s13, %s19_s13 }
   0x9   :  { %p65_p3 = scmp.ne.s32.totalorder %s19_s13, %s64_s21  ;;  %p70_p5 = scmp.lt.s32.totalorder %s64_s21, %s64_s21 }
   0xb   :  { %p71_p6 = por %p70_p5, %p69_p4 }
   0xd   :  { %p72_p7 = pnand %p71_p6, %p65_p3 }
   0xf   :  { %75 = shalt.err (!%p72_p7)
}
  0x10   :  { %21 = dma.hbm_to_vmem [thread:$0]  %s154_s0, 64, %s19_s13, [#allocation5]  }
  0x11   :  { %98 = dma.done.wait [#allocation5], 64  }
  0x12   :  { %99 = vsyncadd [#allocation5], 4294967232  ;;  %v32_v0 = vstv %s155_s1  ;;  %v31_v1 = vld [vmem:[#allocation4] sm:$0x7]  ;;  %v34_v2 = vstv %s156_s2  ;;  %s103_s28 = smov [#allocation7]  }
  0x13   :  { %s43_s29 = sshll.u32 %s103_s28, 4  ;;  %v33_v3 = vmul.f32 %v32_v0, %v31_v1  ;;  %s44_s29 = int_to_ptr.vmem [resolvable:$true] %s43_s29 }
  0x14   :  { %s76_s30 = scalar_lea.vmem %s44_s29, 64  ;;  %p81_p9 = scmp.lt.s32.totalorder %s44_s29, %s44_s29 }
  0x15   :  { %v35_v4 = vadd.f32 %v34_v2, %v33_v3  ;;  %p77_p8 = scmp.ne.s32.totalorder %s44_s29, %s76_s30  ;;  %p82_p10 = scmp.lt.s32.totalorder %s76_s30, %s76_s30 }
  0x17   :  { %36 = vst [vmem:[#allocation7] sm:$0x7] %v35_v4  ;;  %p83_p11 = por %p82_p10, %p81_p9 }
  0x19   :  { %p84_p12 = pnand %p83_p11, %p77_p8 }
  0x1b   :  { %87 = shalt.err (!%p84_p12)
}
  0x1c   :  { %s88_s4 = scalar_lea.hbm %s157_s3, 64 }
  0x1d   :  { %p89_p13 = scmp.ne.s32.totalorder %s157_s3, %s88_s4  ;;  %p92_p0 = scmp.lt.u32.totalorder %s88_s4, %s157_s3 }
  0x1f   :  { %p94_p1 = pnand %p92_p0, %p89_p13 }
  0x21   :  { %97 = shalt.err (!%p94_p1)
}
  0x22   :  { %46 = dma.vmem_to_hbm [thread:$0]  %s44_s29, 64, %s157_s3, [#allocation6]  }
  0x23   :  { %100 = dma.done.wait [#allocation6], 64  }
  0x24   :  { %101 = vsyncadd [#allocation6], 4294967232 }
  0x25   :  { %50 = vsyncpa [#allocation5], 1 }
  0x26   :  { %51 = vsyncpa [#allocation6], 1 }

</bundles_post_ra>
